<compile_context>
chip_gen: v7x
topology: tpu7x:2x2x1
jax: 0.10.0
libtpu: 0.0.40
codegen_flags: <defaults>
</compile_context>

<pallas_src>
import jax
import jax.numpy as jnp
from jax.experimental import pallas as pl
from jax.experimental.pallas import tpu as pltpu


def _mlp_kernel(x_ref, w1_ref, b1_ref, w2_ref, b2_ref, out_ref):
    """Fused fc1 + bias + ReLU + fc2 + bias, single invocation (no grid)."""
    # In-kernel activation cast: f32 -> bf16 on the VPU, hidden under the w1 DMA.
    x_bf16 = x_ref[...].astype(jnp.bfloat16)
    # fc1: bf16 x bf16 -> f32 accumulate on the MXU.
    h = jnp.dot(x_bf16, w1_ref[...], preferred_element_type=jnp.float32)
    h = jnp.maximum(h + b1_ref[...], 0.0)                      # bias + ReLU
    # fc2: tiny (H x C) matmul in f32, then bias.
    logits = jnp.dot(h, w2_ref[...], preferred_element_type=jnp.float32)
    out_ref[...] = (logits + b2_ref[...]).astype(out_ref.dtype)


def init_classifier_params(w1, b1, w2, b2):
    """One-time parameter prep (weight-load time, NOT per forward call).

    w1 lives persistently in bf16 (it is the dominant HBM operand); biases are
    pre-reshaped to 2-D rows; w2/b1/b2 stay f32 for a full-precision epilogue.
    TODO(synk): optionally store w1 as fp8 (v7x) / int8 (v5e/v6e) with a
    per-column scale in the f32 epilogue to halve the w1 DMA again.
    """
    return {
        "w1": jnp.asarray(w1, dtype=jnp.bfloat16),
        "b1": jnp.asarray(b1, dtype=jnp.float32).reshape(1, -1),
        "w2": jnp.asarray(w2, dtype=jnp.float32),
        "b2": jnp.asarray(b2, dtype=jnp.float32).reshape(1, -1),
    }


def classifier_forward(x, params):
    """x: (B, input_size) f32; params from init_classifier_params.
    Returns (B, num_classes) in x.dtype."""
    w1, b1, w2, b2 = params["w1"], params["b1"], params["w2"], params["b2"]
    B, K = x.shape
    H = w1.shape[1]
    C = w2.shape[1]

    vmem = pl.BlockSpec(memory_space=pltpu.MemorySpace.VMEM)

    cost = pl.CostEstimate(
        flops=2 * B * K * H + 2 * B * H * C,
        transcendentals=0,
        bytes_accessed=(x.size * x.dtype.itemsize
                        + w1.size * w1.dtype.itemsize
                        + b1.size * b1.dtype.itemsize
                        + w2.size * w2.dtype.itemsize
                        + b2.size * b2.dtype.itemsize
                        + B * C * x.dtype.itemsize),
    )

    # No grid: whole operands sit in VMEM and the fused MLP runs in a single
    # kernel invocation (see VMEM-growth note at the top of the file).  If
    # batch grows large in serving, add a parallel batch grid axis with
    # constant index_maps for the weights so they stay VMEM-resident.
    return pl.pallas_call(
        _mlp_kernel,
        out_shape=jax.ShapeDtypeStruct((B, C), x.dtype),
        in_specs=[vmem, vmem, vmem, vmem, vmem],
        out_specs=vmem,
        cost_estimate=cost,
    )(x, w1, b1, w2, b2)


if __name__ == "__main__":
    # Shapes implied by the module: input_size=4096, num_classes=3.
    # hidden_size is args.hidden_size in the original; pick a small value.
    batch = 8
    input_size = 4096
    hidden_size = 128
    num_classes = 3

    key = jax.random.PRNGKey(0)
    kx, kw1, kb1, kw2, kb2 = jax.random.split(key, 5)

    # Deterministic synthetic parameters (no checkpoint load).
    x = jax.random.normal(kx, (batch, input_size), dtype=jnp.float32)
    w1 = jax.random.normal(kw1, (input_size, hidden_size), dtype=jnp.float32) * 0.02
    b1 = jax.random.normal(kb1, (hidden_size,), dtype=jnp.float32) * 0.02
    w2 = jax.random.normal(kw2, (hidden_size, num_classes), dtype=jnp.float32) * 0.02
    b2 = jax.random.normal(kb2, (num_classes,), dtype=jnp.float32) * 0.02

    # One-time prep (init / weight-load time); forward path has zero per-call prep.
    params = init_classifier_params(w1, b1, w2, b2)
    fwd = jax.jit(classifier_forward)

    out = fwd(x, params)
    out = jax.block_until_ready(out)
    assert out.shape == (batch, num_classes)

    # Reference 1: bf16-matched (same fc1 precision as the kernel) — tight.
    ref_bf16 = (
        jnp.maximum(
            jnp.dot(
                x.astype(jnp.bfloat16),
                w1.astype(jnp.bfloat16),
                preferred_element_type=jnp.float32,
            )
            + b1,
            0.0,
        )
        @ w2
        + b2
    )
    assert jnp.allclose(out, ref_bf16, atol=1e-3, rtol=1e-3), "mismatch vs bf16 ref"

    # Reference 2: full-f32 PyTorch semantics — bf16-appropriate tolerance.
    ref_f32 = jnp.maximum(x @ w1 + b1, 0.0) @ w2 + b2
    assert jnp.allclose(out, ref_f32, atol=2e-2, rtol=2e-2), "mismatch vs f32 ref"

    print("KERNEL_OK")
</pallas_src>

<mosaic_0001>
module attributes {stable_mosaic.version = 11 : i64} {
  func.func @_mlp_kernel(%arg0: memref<8x4096xf32, #tpu.memory_space<vmem>>, %arg1: memref<4096x128xbf16, #tpu.memory_space<vmem>>, %arg2: memref<1x128xf32, #tpu.memory_space<vmem>>, %arg3: memref<128x3xf32, #tpu.memory_space<vmem>>, %arg4: memref<1x3xf32, #tpu.memory_space<vmem>>, %arg5: memref<8x3xf32, #tpu.memory_space<vmem>>) attributes {dimension_semantics = [], scalar_prefetch = 0 : i64, scratch_operands = 0 : i64, tpu.core_type = #tpu.core_type<tc>} {
    %c0 = arith.constant 0 : index
    %c0_0 = arith.constant 0 : index
    %0 = vector.load %arg0[%c0, %c0_0] : memref<8x4096xf32, #tpu.memory_space<vmem>>, vector<8x4096xf32>
    %1 = arith.truncf %0 : vector<8x4096xf32> to vector<8x4096xbf16>
    %c0_1 = arith.constant 0 : index
    %c0_2 = arith.constant 0 : index
    %2 = vector.load %arg1[%c0_1, %c0_2] : memref<4096x128xbf16, #tpu.memory_space<vmem>>, vector<4096x128xbf16>
    %cst = arith.constant dense<0.000000e+00> : vector<8x128xf32>
    %3 = tpu.matmul %1, %2, %cst {dimension_numbers = #tpu.dot_dimension_numbers<[1], [0], [0], [1], [0, 0, 1, 1], [], []>} : vector<8x4096xbf16>, vector<4096x128xbf16>, vector<8x128xf32> -> vector<8x128xf32>
    %c0_3 = arith.constant 0 : index
    %c0_4 = arith.constant 0 : index
    %4 = vector.load %arg2[%c0_3, %c0_4] : memref<1x128xf32, #tpu.memory_space<vmem>>, vector<1x128xf32>
    %5 = vector.broadcast %4 : vector<1x128xf32> to vector<8x128xf32>
    %6 = arith.addf %3, %5 : vector<8x128xf32>
    %cst_5 = arith.constant 0.000000e+00 : f32
    %7 = vector.broadcast %cst_5 : f32 to vector<8x128xf32>
    %8 = arith.maximumf %6, %7 : vector<8x128xf32>
    %c0_6 = arith.constant 0 : index
    %c0_7 = arith.constant 0 : index
    %9 = vector.load %arg3[%c0_6, %c0_7] : memref<128x3xf32, #tpu.memory_space<vmem>>, vector<128x3xf32>
    %cst_8 = arith.constant dense<0.000000e+00> : vector<8x3xf32>
    %10 = tpu.matmul %8, %9, %cst_8 {dimension_numbers = #tpu.dot_dimension_numbers<[1], [0], [0], [1], [0, 0, 1, 1], [], []>} : vector<8x128xf32>, vector<128x3xf32>, vector<8x3xf32> -> vector<8x3xf32>
    %c0_9 = arith.constant 0 : index
    %c0_10 = arith.constant 0 : index
    %11 = vector.load %arg4[%c0_9, %c0_10] : memref<1x3xf32, #tpu.memory_space<vmem>>, vector<1x3xf32>
    %12 = vector.broadcast %11 : vector<1x3xf32> to vector<8x3xf32>
    %13 = arith.addf %10, %12 : vector<8x3xf32>
    %c0_11 = arith.constant 0 : index
    %c0_12 = arith.constant 0 : index
    %14 = vector.load %arg5[%c0_11, %c0_12] : memref<8x3xf32, #tpu.memory_space<vmem>>, vector<8x3xf32>
    tpu.vector_store %arg5[%c0_11, %c0_12], %13 {strides = array<i32>} : memref<8x3xf32, #tpu.memory_space<vmem>>, vector<8x3xf32>,
    return
  }
}

</mosaic_0001>

<bundles_post_ra>
// kernel: classifier_forward.1
= control target key start
LH: loop header
LB: loop body
LE: loop exit
PB: predicated region body
PF: predicated region fallthrough
CT: control target
= control target key end

     0   :  { %10 = vsyncpa [#allocation3], 0  ;;  %s4030_s0 = inlined_call_operand.hbm [shape: f32[8,4096], index: 0, kind: input, shape index: {}]   ;;  %s4031_s1 = inlined_call_operand.hbm [shape: bf16[4096,128], index: 1, kind: input, shape index: {}]   ;;  %s4032_s2 = inlined_call_operand.vmem [shape: f32[1,128], index: 2, kind: input, shape index: {}]   ;;  %s4033_s3 = inlined_call_operand.vmem [shape: f32[128,3], index: 3, kind: input, shape index: {}]   ;;  %s4034_s4 = inlined_call_operand.vmem [shape: f32[1,3], index: 4, kind: input, shape index: {}]   ;;  %s4035_s5 = inlined_call_operand.vmem [shape: f32[8,3], index: 5, kind: output, shape index: {}]  }
   0x1   :  { %11 = vsyncpa [#allocation5], 0  ;;  %s3905_s18 = smov [#allocation2]   ;;  %s3906_s20 = smov [#allocation4]  }
   0x2   :  { %s18_s19 = sshll.u32 %s3905_s18, 4  ;;  %s27_s21 = sshll.u32 %s3906_s20, 4  ;;  %s19_s19 = int_to_ptr.vmem [resolvable:$true] %s18_s19  ;;  %s3942_s21 = int_to_ptr.vmem [resolvable:$true] %s27_s21 }
   0x3   :  { %s3857_s24 = scalar_lea.hbm %s4030_s0, 4096 }
   0x4   :  { %p3858_p0 = scmp.ne.s32.totalorder %s4030_s0, %s3857_s24  ;;  %p3861_p1 = scmp.lt.u32.totalorder %s3857_s24, %s4030_s0 }
   0x6   :  { %p3863_p2 = pnand %p3861_p1, %p3858_p0 }
   0x8   :  { %3866 = shalt.err (!%p3863_p2)
}
   0x9   :  { %s3867_s29 = scalar_lea.vmem %s19_s19, 4096  ;;  %p3872_p4 = scmp.lt.s32.totalorder %s19_s19, %s19_s19 }
   0xa   :  { %p3868_p3 = scmp.ne.s32.totalorder %s19_s19, %s3867_s29  ;;  %p3873_p5 = scmp.lt.s32.totalorder %s3867_s29, %s3867_s29 }
   0xc   :  { %p3874_p6 = por %p3873_p5, %p3872_p4 }
   0xe   :  { %p3875_p7 = pnand %p3874_p6, %p3868_p3 }
  0x10   :  { %3878 = shalt.err (!%p3875_p7)
}
  0x11   :  { %21 = dma.hbm_to_vmem [thread:$0]  %s4030_s0, 4096, %s19_s19, [#allocation3]  }
  0x12   :  { %s3879_s9 = scalar_lea.hbm %s4031_s1, 32768 }
  0x13   :  { %p3880_p8 = scmp.ne.s32.totalorder %s4031_s1, %s3879_s9  ;;  %p3883_p9 = scmp.lt.u32.totalorder %s3879_s9, %s4031_s1 }
  0x15   :  { %p3885_p10 = pnand %p3883_p9, %p3880_p8 }
  0x17   :  { %3888 = shalt.err (!%p3885_p10)
}
  0x18   :  { %s3889_s14 = scalar_lea.vmem %s3942_s21, 32768  ;;  %p3894_p12 = scmp.lt.s32.totalorder %s3942_s21, %s3942_s21 }
  0x19   :  { %p3890_p11 = scmp.ne.s32.totalorder %s3942_s21, %s3889_s14  ;;  %p3895_p13 = scmp.lt.s32.totalorder %s3889_s14, %s3889_s14 }
  0x1b   :  { %p3896_p0 = por %p3895_p13, %p3894_p12 }
  0x1d   :  { %p3897_p1 = pnand %p3896_p0, %p3890_p11 }
  0x1f   :  { %3900 = shalt.err (!%p3897_p1)
}
  0x20   :  { %s3907_s0 = smov 64   ;;  %s3908_s15 = smov 4  }
  0x21   :  { %33 = dma.hbm_to_vmem [thread:$0]  %s4031_s1, 32768, %s3942_s21, [#allocation5], %s3907_s0, %s3907_s0, %s3908_s15  }
  0x22   :  { %3901 = dma.done.wait [#allocation3], 4096  }
  0x23   :  { %3902 = vsyncadd [#allocation3], 4294963200 }
  0x24   :  { %3903 = dma.done.wait [#allocation5], 32768  }
  0x25   :  { %3904 = vsyncadd [#allocation5], 4294934528  ;;  %v3601_v0 = vld [vmem:[#allocation4 + $0x40] sm:$0xff]   ;;  %v3605_v4 = vld [vmem:[#allocation4 + $0x48] sm:$0xff]   ;;  %vm3910_vm0 = vmmov 0   ;;  %vm2900_vm1 = vcmask 23552  }
  0x26   :  { %v3602_v1 = vld [vmem:[#allocation4 + $0xc0] sm:$0xff]   ;;  %3166 = vmatprep.subr.bf16.mxu0 %v3601_v0  ;;  %v3606_v5 = vld [vmem:[#allocation4 + $0xc8] sm:$0xff]   ;;  %v3609_v8 = vld [vmem:[#allocation4 + $0x50] sm:$0xff]  }
  0x27   :  { %v3603_v2 = vld [vmem:[#allocation4] sm:$0xff]   ;;  %3188 = vmatprep.subr.bf16.mxu1 %v3602_v1  ;;  %v3607_v6 = vld [vmem:[#allocation4 + $0x8] sm:$0xff]   ;;  %v3610_v9 = vld [vmem:[#allocation4 + $0xd0] sm:$0xff]  }
  0x28   :  { %v3604_v3 = vld [vmem:[#allocation4 + $0x80] sm:$0xff]   ;;  %3167 = vmatpush3.bf16.msra.mxu0 %v3603_v2  ;;  %v3608_v7 = vld [vmem:[#allocation4 + $0x88] sm:$0xff]   ;;  %v3611_v10 = vld [vmem:[#allocation4 + $0x10] sm:$0xff]  }
  0x29   :  { %3189 = vmatpush3.bf16.msra.mxu1 %v3604_v3  ;;  %3168 = vmatprep.subr.bf16.mxu0 %v3605_v4  ;;  %v3612_v11 = vld [vmem:[#allocation4 + $0x90] sm:$0xff]   ;;  %v3613_v12 = vld [vmem:[#allocation4 + $0x58] sm:$0xff]   ;;  %v3617_v16 = vld [vmem:[#allocation4 + $0x60] sm:$0xff]  }
  0x2a   :  { %3190 = vmatprep.subr.bf16.mxu1 %v3606_v5  ;;  %v3614_v13 = vld [vmem:[#allocation4 + $0xd8] sm:$0xff]   ;;  %v3618_v17 = vld [vmem:[#allocation4 + $0xe0] sm:$0xff]   ;;  %v3621_v20 = vld [vmem:[#allocation4 + $0x68] sm:$0xff]  }
  0x2b   :  { %v3615_v14 = vld [vmem:[#allocation4 + $0x18] sm:$0xff]   ;;  %v3619_v18 = vld [vmem:[#allocation4 + $0x20] sm:$0xff]   ;;  %v3622_v21 = vld [vmem:[#allocation4 + $0xe8] sm:$0xff]  }
  0x2c   :  { %3169 = vmatpush3.bf16.msra.mxu0 %v3607_v6  ;;  %v3616_v15 = vld [vmem:[#allocation4 + $0x98] sm:$0xff]   ;;  %v3620_v19 = vld [vmem:[#allocation4 + $0xa0] sm:$0xff]   ;;  %v3623_v22 = vld [vmem:[#allocation4 + $0x28] sm:$0xff]  }
  0x2d   :  { %3191 = vmatpush3.bf16.msra.mxu1 %v3608_v7  ;;  %3170 = vmatprep.subr.bf16.mxu0 %v3609_v8  ;;  %v3624_v23 = vld [vmem:[#allocation4 + $0xa8] sm:$0xff]   ;;  %v3625_v24 = vld [vmem:[#allocation4 + $0x70] sm:$0xff]   ;;  %v3629_v28 = vld [vmem:[#allocation4 + $0x78] sm:$0xff]  }
  0x2e   :  { %3192 = vmatprep.subr.bf16.mxu1 %v3610_v9  ;;  %v3626_v25 = vld [vmem:[#allocation4 + $0xf0] sm:$0xff]   ;;  %v3630_v29 = vld [vmem:[#allocation4 + $0xf8] sm:$0xff]   ;;  %v48_v32 = vld [vmem:[#allocation2 + $0x8] sm:$0xff] }
  0x2f   :  { %v3627_v26 = vld [vmem:[#allocation4 + $0x30] sm:$0xff]   ;;  %v3631_v30 = vld [vmem:[#allocation4 + $0x38] sm:$0xff]   ;;  %v47_v34 = vld [vmem:[#allocation2] sm:$0xff]  ;;  %v80_v35 = vpack.c.bf16 %v48_v32, %v48_v32 }
  0x30   :  { %3171 = vmatpush3.bf16.msra.mxu0 %v3611_v10  ;;  %v3628_v27 = vld [vmem:[#allocation4 + $0xb0] sm:$0xff]   ;;  %v3632_v31 = vld [vmem:[#allocation4 + $0xb8] sm:$0xff]   ;;  %v79_v37 = vpack.c.bf16 %v47_v34, %v47_v34  ;;  %v3633_v40 = vld [vmem:[#allocation4 + $0x140] sm:$0xff]  }
  0x31   :  { %3193 = vmatpush3.bf16.msra.mxu1 %v3612_v11  ;;  %3172 = vmatprep.subr.bf16.mxu0 %v3613_v12  ;;  %v50_v33 = vld [vmem:[#allocation2 + $0x18] sm:$0xff]  ;;  %v49_v38 = vld [vmem:[#allocation2 + $0x10] sm:$0xff]  ;;  %v3634_v41 = vld [vmem:[#allocation4 + $0x1c0] sm:$0xff]  }
  0x32   :  { %3194 = vmatprep.subr.bf16.mxu1 %v3614_v13  ;;  %v82_v36 = vpack.c.bf16 %v50_v33, %v50_v33  ;;  %v81_v39 = vpack.c.bf16 %v49_v38, %v49_v38  ;;  %2198 = vmatprep.mubr.bf16.mxu0 %v80_v35  ;;  %v3635_v42 = vld [vmem:[#allocation4 + $0x100] sm:$0xff]   ;;  %v3637_v44 = vld [vmem:[#allocation4 + $0x148] sm:$0xff]   ;;  %v3641_v48 = vld [vmem:[#allocation4 + $0x150] sm:$0xff]  }
  0x33   :  { %v3636_v43 = vld [vmem:[#allocation4 + $0x180] sm:$0xff]   ;;  %v3638_v45 = vld [vmem:[#allocation4 + $0x1c8] sm:$0xff]   ;;  %v3642_v49 = vld [vmem:[#allocation4 + $0x1d0] sm:$0xff]  }
  0x34   :  { %3173 = vmatpush3.bf16.msra.mxu0 %v3615_v14  ;;  %2238 = vmatprep.mubr.bf16.mxu1 %v82_v36  ;;  %v3639_v46 = vld [vmem:[#allocation4 + $0x108] sm:$0xff]   ;;  %v3643_v50 = vld [vmem:[#allocation4 + $0x110] sm:$0xff]   ;;  %v3645_v52 = vld [vmem:[#allocation4 + $0x158] sm:$0xff]  }
  0x35   :  { %3195 = vmatpush3.bf16.msra.mxu1 %v3616_v15  ;;  %3174 = vmatprep.subr.bf16.mxu0 %v3617_v16  ;;  %v3640_v47 = vld [vmem:[#allocation4 + $0x188] sm:$0xff]   ;;  %v3644_v51 = vld [vmem:[#allocation4 + $0x190] sm:$0xff]   ;;  %v3646_v53 = vld [vmem:[#allocation4 + $0x1d8] sm:$0xff]  }
  0x36   :  { %3196 = vmatprep.subr.bf16.mxu1 %v3618_v17  ;;  %v3647_v54 = vld [vmem:[#allocation4 + $0x118] sm:$0xff]   ;;  %v3649_v56 = vld [vmem:[#allocation4 + $0x160] sm:$0xff]   ;;  %v3653_v60 = vld [vmem:[#allocation4 + $0x168] sm:$0xff]  }
  0x37   :  { %v3648_v55 = vld [vmem:[#allocation4 + $0x198] sm:$0xff]   ;;  %v3650_v57 = vld [vmem:[#allocation4 + $0x1e0] sm:$0xff]   ;;  %v3654_v61 = vld [vmem:[#allocation4 + $0x1e8] sm:$0xff]  }
  0x38   :  { %3175 = vmatpush3.bf16.msra.mxu0 %v3619_v18  ;;  %v3651_v58 = vld [vmem:[#allocation4 + $0x120] sm:$0xff]   ;;  %v3655_v62 = vld [vmem:[#allocation4 + $0x128] sm:$0xff]   ;;  %v3657_v0 = vld [vmem:[#allocation4 + $0x170] sm:$0xff]  }
  0x39   :  { %3197 = vmatpush3.bf16.msra.mxu1 %v3620_v19  ;;  %3176 = vmatprep.subr.bf16.mxu0 %v3621_v20  ;;  %v3652_v59 = vld [vmem:[#allocation4 + $0x1a0] sm:$0xff]   ;;  %v3656_v63 = vld [vmem:[#allocation4 + $0x1a8] sm:$0xff]   ;;  %v3658_v1 = vld [vmem:[#allocation4 + $0x1f0] sm:$0xff]  }
  0x3a   :  { %3198 = vmatprep.subr.bf16.mxu1 %v3622_v21  ;;  %v3659_v2 = vld [vmem:[#allocation4 + $0x130] sm:$0xff]   ;;  %v3661_v4 = vld [vmem:[#allocation4 + $0x178] sm:$0xff]   ;;  %v52_v8 = vld [vmem:[#allocation2 + $0x28] sm:$0xff] }
  0x3b   :  { %v3660_v3 = vld [vmem:[#allocation4 + $0x1b0] sm:$0xff]   ;;  %v3662_v5 = vld [vmem:[#allocation4 + $0x1f8] sm:$0xff]   ;;  %v84_v10 = vpack.c.bf16 %v52_v8, %v52_v8  ;;  %v51_v12 = vld [vmem:[#allocation2 + $0x20] sm:$0xff] }
  0x3c   :  { %3177 = vmatpush3.bf16.msra.mxu0 %v3623_v22  ;;  %v3663_v6 = vld [vmem:[#allocation4 + $0x138] sm:$0xff]   ;;  %v53_v13 = vld [vmem:[#allocation2 + $0x30] sm:$0xff]  ;;  %v83_v14 = vpack.c.bf16 %v51_v12, %v51_v12  ;;  %v3665_v16 = vld [vmem:[#allocation4 + $0x240] sm:$0xff]  }
  0x3d   :  { %3199 = vmatpush3.bf16.msra.mxu1 %v3624_v23  ;;  %3178 = vmatprep.subr.bf16.mxu0 %v3625_v24  ;;  %v3664_v7 = vld [vmem:[#allocation4 + $0x1b8] sm:$0xff]   ;;  %v85_v15 = vpack.c.bf16 %v53_v13, %v53_v13  ;;  %v3666_v17 = vld [vmem:[#allocation4 + $0x2c0] sm:$0xff]   ;;  %v3669_v20 = vld [vmem:[#allocation4 + $0x248] sm:$0xff]  }
  0x3e   :  { %3200 = vmatprep.subr.bf16.mxu1 %v3626_v25  ;;  %v54_v9 = vld [vmem:[#allocation2 + $0x38] sm:$0xff]  ;;  %v3667_v18 = vld [vmem:[#allocation4 + $0x200] sm:$0xff]   ;;  %v3670_v21 = vld [vmem:[#allocation4 + $0x2c8] sm:$0xff]  }
  0x3f   :  { %v86_v11 = vpack.c.bf16 %v54_v9, %v54_v9  ;;  %v3668_v19 = vld [vmem:[#allocation4 + $0x280] sm:$0xff]   ;;  %v3671_v22 = vld [vmem:[#allocation4 + $0x208] sm:$0xff]   ;;  %v3673_v24 = vld [vmem:[#allocation4 + $0x250] sm:$0xff]  }
  0x40   :  { %3179 = vmatpush3.bf16.msra.mxu0 %v3627_v26  ;;  %v3672_v23 = vld [vmem:[#allocation4 + $0x288] sm:$0xff]   ;;  %v3674_v25 = vld [vmem:[#allocation4 + $0x2d0] sm:$0xff]   ;;  %v3681_v32 = vld [vmem:[#allocation4 + $0x260] sm:$0xff]  }
  0x41   :  { %3201 = vmatpush3.bf16.msra.mxu1 %v3628_v27  ;;  %3180 = vmatprep.subr.bf16.mxu0 %v3629_v28  ;;  %v3675_v26 = vld [vmem:[#allocation4 + $0x210] sm:$0xff]   ;;  %v3677_v28 = vld [vmem:[#allocation4 + $0x258] sm:$0xff]   ;;  %v3682_v33 = vld [vmem:[#allocation4 + $0x2e0] sm:$0xff]  }
  0x42   :  { %3202 = vmatprep.subr.bf16.mxu1 %v3630_v29  ;;  %v3676_v27 = vld [vmem:[#allocation4 + $0x290] sm:$0xff]   ;;  %v3678_v29 = vld [vmem:[#allocation4 + $0x2d8] sm:$0xff]   ;;  %v3683_v34 = vld [vmem:[#allocation4 + $0x220] sm:$0xff]  }
  0x43   :  { %v3684_v35 = vld [vmem:[#allocation4 + $0x2a0] sm:$0xff]   ;;  %v3685_v36 = vld [vmem:[#allocation4 + $0x268] sm:$0xff]  }
  0x44   :  { %3181 = vmatpush3.bf16.msra.mxu0 %v3631_v30  ;;  %v3679_v30 = vld [vmem:[#allocation4 + $0x218] sm:$0xff]   ;;  %v3687_v38 = vld [vmem:[#allocation4 + $0x228] sm:$0xff]   ;;  %v3713_v8 = vld [vmem:[#allocation4 + $0x360] sm:$0xff]  }
  0x45   :  { %3203 = vmatpush3.bf16.msra.mxu1 %v3632_v31  ;;  %3210 = vmatprep.subr.bf16.mxu0 %v3633_v40  ;;  %v3680_v31 = vld [vmem:[#allocation4 + $0x298] sm:$0xff]   ;;  %v3689_v40 = vld [vmem:[#allocation4 + $0x270] sm:$0xff]   ;;  %v3714_v9 = vld [vmem:[#allocation4 + $0x3e0] sm:$0xff]  }
  0x46   :  { %3232 = vmatprep.subr.bf16.mxu1 %v3634_v41  ;;  %v3690_v41 = vld [vmem:[#allocation4 + $0x2f0] sm:$0xff]   ;;  %v3717_v12 = vld [vmem:[#allocation4 + $0x368] sm:$0xff]  }
  0x47   :  { %2199 = vmatmul.mubr.bf16.vlgmr.msra.gmra.mrb[0].mxu0 %v79_v37  ;;  %v3686_v37 = vld [vmem:[#allocation4 + $0x2e8] sm:$0xff]  }
  0x48   :  { %2239 = vmatmul.mubr.bf16.vlgmr.msra.gmra.mrb[0].mxu1 %v81_v39  ;;  %3211 = vmatpush3.bf16.msra.mxu0 %v3635_v42  ;;  %v3688_v39 = vld [vmem:[#allocation4 + $0x2a8] sm:$0xff]   ;;  %v3691_v42 = vld [vmem:[#allocation4 + $0x230] sm:$0xff]  }
  0x49   :  { %3233 = vmatpush3.bf16.msra.mxu1 %v3636_v43  ;;  %3212 = vmatprep.subr.bf16.mxu0 %v3637_v44  ;;  %v3692_v43 = vld [vmem:[#allocation4 + $0x2b0] sm:$0xff]   ;;  %v3693_v44 = vld [vmem:[#allocation4 + $0x278] sm:$0xff]   ;;  %v3718_v13 = vld [vmem:[#allocation4 + $0x3e8] sm:$0xff]  }
  0x4a   :  { %3234 = vmatprep.subr.bf16.mxu1 %v3638_v45  ;;  %2278 = vmatprep.mubr.bf16.mxu0 %v84_v10  ;;  %v3694_v45 = vld [vmem:[#allocation4 + $0x2f8] sm:$0xff]   ;;  %v3715_v10 = vld [vmem:[#allocation4 + $0x320] sm:$0xff]  }
  0x4b   :  { %2318 = vmatprep.mubr.bf16.mxu1 %v86_v11  ;;  %v3716_v11 = vld [vmem:[#allocation4 + $0x3a0] sm:$0xff]  }
  0x4c   :  { %3213 = vmatpush3.bf16.msra.mxu0 %v3639_v46  ;;  %v3695_v46 = vld [vmem:[#allocation4 + $0x238] sm:$0xff]  }
  0x4d   :  { %3235 = vmatpush3.bf16.msra.mxu1 %v3640_v47  ;;  %3214 = vmatprep.subr.bf16.mxu0 %v3641_v48  ;;  %v3696_v47 = vld [vmem:[#allocation4 + $0x2b8] sm:$0xff]   ;;  %v56_v48 = vld [vmem:[#allocation2 + $0x48] sm:$0xff] }
  0x4e   :  { %3236 = vmatprep.subr.bf16.mxu1 %v3642_v49  ;;  %v88_v49 = vpack.c.bf16 %v56_v48, %v56_v48  ;;  %v3745_v48 = vld [vmem:[#allocation4 + $0x460] sm:$0xff]  }
  0x50   :  { %3215 = vmatpush3.bf16.msra.mxu0 %v3643_v50  ;;  %v58_v50 = vld [vmem:[#allocation2 + $0x58] sm:$0xff] }
  0x51   :  { %3237 = vmatpush3.bf16.msra.mxu1 %v3644_v51  ;;  %3216 = vmatprep.subr.bf16.mxu0 %v3645_v52  ;;  %v55_v51 = vld [vmem:[#allocation2 + $0x40] sm:$0xff]  ;;  %v57_v52 = vld [vmem:[#allocation2 + $0x50] sm:$0xff] }
  0x52   :  { %3238 = vmatprep.subr.bf16.mxu1 %v3646_v53  ;;  %v90_v53 = vpack.c.bf16 %v58_v50, %v58_v50  ;;  %v3747_v50 = vld [vmem:[#allocation4 + $0x420] sm:$0xff]  }
  0x54   :  { %3217 = vmatpush3.bf16.msra.mxu0 %v3647_v54  ;;  %v87_v54 = vpack.c.bf16 %v55_v51, %v55_v51  ;;  %v3748_v51 = vld [vmem:[#allocation4 + $0x4a0] sm:$0xff]  }
  0x55   :  { %3239 = vmatpush3.bf16.msra.mxu1 %v3648_v55  ;;  %3218 = vmatprep.subr.bf16.mxu0 %v3649_v56  ;;  %v89_v55 = vpack.c.bf16 %v57_v52, %v57_v52  ;;  %v3697_v56 = vld [vmem:[#allocation4 + $0x340] sm:$0xff]   ;;  %v3749_v52 = vld [vmem:[#allocation4 + $0x468] sm:$0xff]  }
  0x56   :  { %3240 = vmatprep.subr.bf16.mxu1 %v3650_v57  ;;  %v3698_v57 = vld [vmem:[#allocation4 + $0x3c0] sm:$0xff]  }
  0x58   :  { %3219 = vmatpush3.bf16.msra.mxu0 %v3651_v58  ;;  %v3699_v58 = vld [vmem:[#allocation4 + $0x300] sm:$0xff]  }
  0x59   :  { %3241 = vmatpush3.bf16.msra.mxu1 %v3652_v59  ;;  %3220 = vmatprep.subr.bf16.mxu0 %v3653_v60  ;;  %v3700_v59 = vld [vmem:[#allocation4 + $0x380] sm:$0xff]   ;;  %v3701_v60 = vld [vmem:[#allocation4 + $0x348] sm:$0xff]  }
  0x5a   :  { %3242 = vmatprep.subr.bf16.mxu1 %v3654_v61  ;;  %v3702_v61 = vld [vmem:[#allocation4 + $0x3c8] sm:$0xff]  }
  0x5c   :  { %3221 = vmatpush3.bf16.msra.mxu0 %v3655_v62  ;;  %v3703_v62 = vld [vmem:[#allocation4 + $0x308] sm:$0xff]  }
  0x5d   :  { %3243 = vmatpush3.bf16.msra.mxu1 %v3656_v63  ;;  %3222 = vmatprep.subr.bf16.mxu0 %v3657_v0  ;;  %v3704_v63 = vld [vmem:[#allocation4 + $0x388] sm:$0xff]   ;;  %v3705_v0 = vld [vmem:[#allocation4 + $0x350] sm:$0xff]  }
  0x5e   :  { %3244 = vmatprep.subr.bf16.mxu1 %v3658_v1  ;;  %v3706_v1 = vld [vmem:[#allocation4 + $0x3d0] sm:$0xff]  }
  0x60   :  { %3223 = vmatpush3.bf16.msra.mxu0 %v3659_v2  ;;  %v3707_v2 = vld [vmem:[#allocation4 + $0x310] sm:$0xff]  }
  0x61   :  { %3245 = vmatpush3.bf16.msra.mxu1 %v3660_v3  ;;  %3224 = vmatprep.subr.bf16.mxu0 %v3661_v4  ;;  %v3708_v3 = vld [vmem:[#allocation4 + $0x390] sm:$0xff]   ;;  %v3709_v4 = vld [vmem:[#allocation4 + $0x358] sm:$0xff]  }
  0x62   :  { %3246 = vmatprep.subr.bf16.mxu1 %v3662_v5  ;;  %v3710_v5 = vld [vmem:[#allocation4 + $0x3d8] sm:$0xff]  }
  0x64   :  { %3225 = vmatpush3.bf16.msra.mxu0 %v3663_v6  ;;  %v3711_v6 = vld [vmem:[#allocation4 + $0x318] sm:$0xff]  }
  0x65   :  { %3247 = vmatpush3.bf16.msra.mxu1 %v3664_v7  ;;  %3254 = vmatprep.subr.bf16.mxu0 %v3665_v16  ;;  %v3712_v7 = vld [vmem:[#allocation4 + $0x398] sm:$0xff]   ;;  %v3721_v16 = vld [vmem:[#allocation4 + $0x370] sm:$0xff]  }
  0x66   :  { %3276 = vmatprep.subr.bf16.mxu1 %v3666_v17  ;;  %v3722_v17 = vld [vmem:[#allocation4 + $0x3f0] sm:$0xff]  }
  0x67   :  { %2279 = vmatmul.mubr.bf16.vlgmr.msra.gmra.mrb[4].mxu0 %v83_v14  ;;  %v3719_v14 = vld [vmem:[#allocation4 + $0x328] sm:$0xff]  }
  0x68   :  { %2319 = vmatmul.mubr.bf16.vlgmr.msra.gmra.mrb[4].mxu1 %v85_v15  ;;  %3255 = vmatpush3.bf16.msra.mxu0 %v3667_v18  ;;  %v3720_v15 = vld [vmem:[#allocation4 + $0x3a8] sm:$0xff]   ;;  %v3723_v18 = vld [vmem:[#allocation4 + $0x330] sm:$0xff]  }
  0x69   :  { %3277 = vmatpush3.bf16.msra.mxu1 %v3668_v19  ;;  %3256 = vmatprep.subr.bf16.mxu0 %v3669_v20  ;;  %v3724_v19 = vld [vmem:[#allocation4 + $0x3b0] sm:$0xff]   ;;  %v3725_v20 = vld [vmem:[#allocation4 + $0x378] sm:$0xff]  }
  0x6a   :  { %3278 = vmatprep.subr.bf16.mxu1 %v3670_v21  ;;  %2358 = vmatprep.mubr.bf16.mxu0 %v88_v49  ;;  %v3726_v21 = vld [vmem:[#allocation4 + $0x3f8] sm:$0xff]   ;;  %v3746_v49 = vld [vmem:[#allocation4 + $0x4e0] sm:$0xff]  }
  0x6b   :  { %2398 = vmatprep.mubr.bf16.mxu1 %v90_v53  ;;  %v3750_v53 = vld [vmem:[#allocation4 + $0x4e8] sm:$0xff]  }
  0x6c   :  { %3257 = vmatpush3.bf16.msra.mxu0 %v3671_v22  ;;  %v3727_v22 = vld [vmem:[#allocation4 + $0x338] sm:$0xff]  }
  0x6d   :  { %3279 = vmatpush3.bf16.msra.mxu1 %v3672_v23  ;;  %3258 = vmatprep.subr.bf16.mxu0 %v3673_v24  ;;  %v3728_v23 = vld [vmem:[#allocation4 + $0x3b8] sm:$0xff]   ;;  %v60_v24 = vld [vmem:[#allocation2 + $0x68] sm:$0xff] }
  0x6e   :  { %3280 = vmatprep.subr.bf16.mxu1 %v3674_v25  ;;  %v62_v25 = vld [vmem:[#allocation2 + $0x78] sm:$0xff] }
  0x70   :  { %3259 = vmatpush3.bf16.msra.mxu0 %v3675_v26  ;;  %v59_v26 = vld [vmem:[#allocation2 + $0x60] sm:$0xff] }
  0x71   :  { %3281 = vmatpush3.bf16.msra.mxu1 %v3676_v27  ;;  %3260 = vmatprep.subr.bf16.mxu0 %v3677_v28  ;;  %v92_v27 = vpack.c.bf16 %v60_v24, %v60_v24  ;;  %v94_v28 = vpack.c.bf16 %v62_v25, %v62_v25  ;;  %v3777_v24 = vld [vmem:[#allocation4 + $0x560] sm:$0xff]  }
  0x72   :  { %3282 = vmatprep.subr.bf16.mxu1 %v3678_v29  ;;  %v91_v29 = vpack.c.bf16 %v59_v26, %v59_v26  ;;  %v3778_v25 = vld [vmem:[#allocation4 + $0x5e0] sm:$0xff]  }
  0x73   :  { %v3779_v26 = vld [vmem:[#allocation4 + $0x520] sm:$0xff]  }
  0x74   :  { %3261 = vmatpush3.bf16.msra.mxu0 %v3679_v30  ;;  %v61_v30 = vld [vmem:[#allocation2 + $0x70] sm:$0xff] }
  0x75   :  { %3283 = vmatpush3.bf16.msra.mxu1 %v3680_v31  ;;  %3262 = vmatprep.subr.bf16.mxu0 %v3681_v32  ;;  %v93_v31 = vpack.c.bf16 %v61_v30, %v61_v30  ;;  %v3729_v32 = vld [vmem:[#allocation4 + $0x440] sm:$0xff]   ;;  %v3783_v30 = vld [vmem:[#allocation4 + $0x528] sm:$0xff]  }
  0x76   :  { %3284 = vmatprep.subr.bf16.mxu1 %v3682_v33  ;;  %v3730_v33 = vld [vmem:[#allocation4 + $0x4c0] sm:$0xff]  }
  0x78   :  { %3263 = vmatpush3.bf16.msra.mxu0 %v3683_v34  ;;  %v3731_v34 = vld [vmem:[#allocation4 + $0x400] sm:$0xff]  }
  0x79   :  { %3285 = vmatpush3.bf16.msra.mxu1 %v3684_v35  ;;  %3264 = vmatprep.subr.bf16.mxu0 %v3685_v36  ;;  %v3732_v35 = vld [vmem:[#allocation4 + $0x480] sm:$0xff]   ;;  %v3733_v36 = vld [vmem:[#allocation4 + $0x448] sm:$0xff]  }
  0x7a   :  { %3286 = vmatprep.subr.bf16.mxu1 %v3686_v37  ;;  %v3734_v37 = vld [vmem:[#allocation4 + $0x4c8] sm:$0xff]  }
  0x7c   :  { %3265 = vmatpush3.bf16.msra.mxu0 %v3687_v38  ;;  %v3735_v38 = vld [vmem:[#allocation4 + $0x408] sm:$0xff]  }
  0x7d   :  { %3287 = vmatpush3.bf16.msra.mxu1 %v3688_v39  ;;  %3266 = vmatprep.subr.bf16.mxu0 %v3689_v40  ;;  %v3736_v39 = vld [vmem:[#allocation4 + $0x488] sm:$0xff]   ;;  %v3737_v40 = vld [vmem:[#allocation4 + $0x450] sm:$0xff]  }
  0x7e   :  { %3288 = vmatprep.subr.bf16.mxu1 %v3690_v41  ;;  %v3738_v41 = vld [vmem:[#allocation4 + $0x4d0] sm:$0xff]  }
  0x80   :  { %3267 = vmatpush3.bf16.msra.mxu0 %v3691_v42  ;;  %v3739_v42 = vld [vmem:[#allocation4 + $0x410] sm:$0xff]  }
  0x81   :  { %3289 = vmatpush3.bf16.msra.mxu1 %v3692_v43  ;;  %3268 = vmatprep.subr.bf16.mxu0 %v3693_v44  ;;  %v3740_v43 = vld [vmem:[#allocation4 + $0x490] sm:$0xff]   ;;  %v3741_v44 = vld [vmem:[#allocation4 + $0x458] sm:$0xff]  }
  0x82   :  { %3290 = vmatprep.subr.bf16.mxu1 %v3694_v45  ;;  %v3742_v45 = vld [vmem:[#allocation4 + $0x4d8] sm:$0xff]  }
  0x84   :  { %3269 = vmatpush3.bf16.msra.mxu0 %v3695_v46  ;;  %v3743_v46 = vld [vmem:[#allocation4 + $0x418] sm:$0xff]  }
  0x85   :  { %3291 = vmatpush3.bf16.msra.mxu1 %v3696_v47  ;;  %3298 = vmatprep.subr.bf16.mxu0 %v3697_v56  ;;  %v3744_v47 = vld [vmem:[#allocation4 + $0x498] sm:$0xff]   ;;  %v3753_v56 = vld [vmem:[#allocation4 + $0x470] sm:$0xff]  }
  0x86   :  { %3320 = vmatprep.subr.bf16.mxu1 %v3698_v57  ;;  %v3754_v57 = vld [vmem:[#allocation4 + $0x4f0] sm:$0xff]  }
  0x87   :  { %2359 = vmatmul.mubr.bf16.vlgmr.msra.gmra.mrb[8].mxu0 %v87_v54  ;;  %v3751_v54 = vld [vmem:[#allocation4 + $0x428] sm:$0xff]  }
  0x88   :  { %2399 = vmatmul.mubr.bf16.vlgmr.msra.gmra.mrb[8].mxu1 %v89_v55  ;;  %3299 = vmatpush3.bf16.msra.mxu0 %v3699_v58  ;;  %v3752_v55 = vld [vmem:[#allocation4 + $0x4a8] sm:$0xff]   ;;  %v3755_v58 = vld [vmem:[#allocation4 + $0x430] sm:$0xff]  }
  0x89   :  { %3321 = vmatpush3.bf16.msra.mxu1 %v3700_v59  ;;  %3300 = vmatprep.subr.bf16.mxu0 %v3701_v60  ;;  %v3756_v59 = vld [vmem:[#allocation4 + $0x4b0] sm:$0xff]   ;;  %v3757_v60 = vld [vmem:[#allocation4 + $0x478] sm:$0xff]  }
  0x8a   :  { %3322 = vmatprep.subr.bf16.mxu1 %v3702_v61  ;;  %2438 = vmatprep.mubr.bf16.mxu0 %v92_v27  ;;  %v3758_v61 = vld [vmem:[#allocation4 + $0x4f8] sm:$0xff]   ;;  %v3780_v27 = vld [vmem:[#allocation4 + $0x5a0] sm:$0xff]  }
  0x8b   :  { %2478 = vmatprep.mubr.bf16.mxu1 %v94_v28  ;;  %v3781_v28 = vld [vmem:[#allocation4 + $0x568] sm:$0xff]  }
  0x8c   :  { %3301 = vmatpush3.bf16.msra.mxu0 %v3703_v62  ;;  %v3759_v62 = vld [vmem:[#allocation4 + $0x438] sm:$0xff]  }
  0x8d   :  { %3323 = vmatpush3.bf16.msra.mxu1 %v3704_v63  ;;  %3302 = vmatprep.subr.bf16.mxu0 %v3705_v0  ;;  %v3760_v63 = vld [vmem:[#allocation4 + $0x4b8] sm:$0xff]   ;;  %v64_v0 = vld [vmem:[#allocation2 + $0x88] sm:$0xff] }
  0x8e   :  { %3324 = vmatprep.subr.bf16.mxu1 %v3706_v1  ;;  %v66_v1 = vld [vmem:[#allocation2 + $0x98] sm:$0xff] }
  0x90   :  { %3303 = vmatpush3.bf16.msra.mxu0 %v3707_v2  ;;  %v96_v2 = vpack.c.bf16 %v64_v0, %v64_v0  ;;  %v3809_v0 = vld [vmem:[#allocation4 + $0x660] sm:$0xff]  }
  0x91   :  { %3325 = vmatpush3.bf16.msra.mxu1 %v3708_v3  ;;  %3304 = vmatprep.subr.bf16.mxu0 %v3709_v4  ;;  %v98_v3 = vpack.c.bf16 %v66_v1, %v66_v1  ;;  %v63_v4 = vld [vmem:[#allocation2 + $0x80] sm:$0xff] }
  0x92   :  { %3326 = vmatprep.subr.bf16.mxu1 %v3710_v5  ;;  %v65_v5 = vld [vmem:[#allocation2 + $0x90] sm:$0xff]  ;;  %v3810_v1 = vld [vmem:[#allocation4 + $0x6e0] sm:$0xff]  }
  0x94   :  { %3305 = vmatpush3.bf16.msra.mxu0 %v3711_v6  ;;  %v95_v6 = vpack.c.bf16 %v63_v4, %v63_v4  ;;  %v3813_v4 = vld [vmem:[#allocation4 + $0x668] sm:$0xff]  }
  0x95   :  { %3327 = vmatpush3.bf16.msra.mxu1 %v3712_v7  ;;  %3306 = vmatprep.subr.bf16.mxu0 %v3713_v8  ;;  %v97_v7 = vpack.c.bf16 %v65_v5, %v65_v5  ;;  %v3761_v8 = vld [vmem:[#allocation4 + $0x540] sm:$0xff]   ;;  %v3814_v5 = vld [vmem:[#allocation4 + $0x6e8] sm:$0xff]  }
  0x96   :  { %3328 = vmatprep.subr.bf16.mxu1 %v3714_v9  ;;  %v3762_v9 = vld [vmem:[#allocation4 + $0x5c0] sm:$0xff]  }
  0x98   :  { %3307 = vmatpush3.bf16.msra.mxu0 %v3715_v10  ;;  %v3763_v10 = vld [vmem:[#allocation4 + $0x500] sm:$0xff]  }
  0x99   :  { %3329 = vmatpush3.bf16.msra.mxu1 %v3716_v11  ;;  %3308 = vmatprep.subr.bf16.mxu0 %v3717_v12  ;;  %v3764_v11 = vld [vmem:[#allocation4 + $0x580] sm:$0xff]   ;;  %v3765_v12 = vld [vmem:[#allocation4 + $0x548] sm:$0xff]  }
  0x9a   :  { %3330 = vmatprep.subr.bf16.mxu1 %v3718_v13  ;;  %v3766_v13 = vld [vmem:[#allocation4 + $0x5c8] sm:$0xff]  }
  0x9c   :  { %3309 = vmatpush3.bf16.msra.mxu0 %v3719_v14  ;;  %v3767_v14 = vld [vmem:[#allocation4 + $0x508] sm:$0xff]  }
  0x9d   :  { %3331 = vmatpush3.bf16.msra.mxu1 %v3720_v15  ;;  %3310 = vmatprep.subr.bf16.mxu0 %v3721_v16  ;;  %v3768_v15 = vld [vmem:[#allocation4 + $0x588] sm:$0xff]   ;;  %v3769_v16 = vld [vmem:[#allocation4 + $0x550] sm:$0xff]  }
  0x9e   :  { %3332 = vmatprep.subr.bf16.mxu1 %v3722_v17  ;;  %v3770_v17 = vld [vmem:[#allocation4 + $0x5d0] sm:$0xff]  }
  0xa0   :  { %3311 = vmatpush3.bf16.msra.mxu0 %v3723_v18  ;;  %v3771_v18 = vld [vmem:[#allocation4 + $0x510] sm:$0xff]  }
  0xa1   :  { %3333 = vmatpush3.bf16.msra.mxu1 %v3724_v19  ;;  %3312 = vmatprep.subr.bf16.mxu0 %v3725_v20  ;;  %v3772_v19 = vld [vmem:[#allocation4 + $0x590] sm:$0xff]   ;;  %v3773_v20 = vld [vmem:[#allocation4 + $0x558] sm:$0xff]  }
  0xa2   :  { %3334 = vmatprep.subr.bf16.mxu1 %v3726_v21  ;;  %v3774_v21 = vld [vmem:[#allocation4 + $0x5d8] sm:$0xff]  }
  0xa4   :  { %3313 = vmatpush3.bf16.msra.mxu0 %v3727_v22  ;;  %v3775_v22 = vld [vmem:[#allocation4 + $0x518] sm:$0xff]  }
  0xa5   :  { %3335 = vmatpush3.bf16.msra.mxu1 %v3728_v23  ;;  %3342 = vmatprep.subr.bf16.mxu0 %v3729_v32  ;;  %v3776_v23 = vld [vmem:[#allocation4 + $0x598] sm:$0xff]   ;;  %v3785_v32 = vld [vmem:[#allocation4 + $0x570] sm:$0xff]  }
  0xa6   :  { %3364 = vmatprep.subr.bf16.mxu1 %v3730_v33  ;;  %v3786_v33 = vld [vmem:[#allocation4 + $0x5f0] sm:$0xff]  }
  0xa7   :  { %2439 = vmatmul.mubr.bf16.vlgmr.msra.gmra.mrb[12].mxu0 %v91_v29  ;;  %v3782_v29 = vld [vmem:[#allocation4 + $0x5e8] sm:$0xff]  }
  0xa8   :  { %2479 = vmatmul.mubr.bf16.vlgmr.msra.gmra.mrb[12].mxu1 %v93_v31  ;;  %3343 = vmatpush3.bf16.msra.mxu0 %v3731_v34  ;;  %v3784_v31 = vld [vmem:[#allocation4 + $0x5a8] sm:$0xff]   ;;  %v3787_v34 = vld [vmem:[#allocation4 + $0x530] sm:$0xff]  }
  0xa9   :  { %3365 = vmatpush3.bf16.msra.mxu1 %v3732_v35  ;;  %3344 = vmatprep.subr.bf16.mxu0 %v3733_v36  ;;  %v3788_v35 = vld [vmem:[#allocation4 + $0x5b0] sm:$0xff]   ;;  %v3789_v36 = vld [vmem:[#allocation4 + $0x578] sm:$0xff]  }
  0xaa   :  { %3366 = vmatprep.subr.bf16.mxu1 %v3734_v37  ;;  %2518 = vmatprep.mubr.bf16.mxu0 %v96_v2  ;;  %v3790_v37 = vld [vmem:[#allocation4 + $0x5f8] sm:$0xff]   ;;  %v3811_v2 = vld [vmem:[#allocation4 + $0x620] sm:$0xff]  }
  0xab   :  { %2558 = vmatprep.mubr.bf16.mxu1 %v98_v3  ;;  %v3812_v3 = vld [vmem:[#allocation4 + $0x6a0] sm:$0xff]  }
  0xac   :  { %3345 = vmatpush3.bf16.msra.mxu0 %v3735_v38  ;;  %v3791_v38 = vld [vmem:[#allocation4 + $0x538] sm:$0xff]  }
  0xad   :  { %3367 = vmatpush3.bf16.msra.mxu1 %v3736_v39  ;;  %3346 = vmatprep.subr.bf16.mxu0 %v3737_v40  ;;  %v3792_v39 = vld [vmem:[#allocation4 + $0x5b8] sm:$0xff]   ;;  %v68_v40 = vld [vmem:[#allocation2 + $0xa8] sm:$0xff] }
  0xae   :  { %3368 = vmatprep.subr.bf16.mxu1 %v3738_v41  ;;  %v100_v41 = vpack.c.bf16 %v68_v40, %v68_v40 }
  0xb0   :  { %3347 = vmatpush3.bf16.msra.mxu0 %v3739_v42  ;;  %v70_v42 = vld [vmem:[#allocation2 + $0xb8] sm:$0xff] }
  0xb1   :  { %3369 = vmatpush3.bf16.msra.mxu1 %v3740_v43  ;;  %3348 = vmatprep.subr.bf16.mxu0 %v3741_v44  ;;  %v67_v43 = vld [vmem:[#allocation2 + $0xa0] sm:$0xff]  ;;  %v69_v44 = vld [vmem:[#allocation2 + $0xb0] sm:$0xff] }
  0xb2   :  { %3370 = vmatprep.subr.bf16.mxu1 %v3742_v45  ;;  %v102_v45 = vpack.c.bf16 %v70_v42, %v70_v42 }
  0xb4   :  { %3349 = vmatpush3.bf16.msra.mxu0 %v3743_v46  ;;  %v99_v46 = vpack.c.bf16 %v67_v43, %v67_v43  ;;  %v3841_v43 = vld [vmem:[#allocation4 + $0x760] sm:$0xff]  }
  0xb5   :  { %3371 = vmatpush3.bf16.msra.mxu1 %v3744_v47  ;;  %3350 = vmatprep.subr.bf16.mxu0 %v3745_v48  ;;  %v101_v47 = vpack.c.bf16 %v69_v44, %v69_v44  ;;  %v3793_v48 = vld [vmem:[#allocation4 + $0x640] sm:$0xff]  }
  0xb6   :  { %3372 = vmatprep.subr.bf16.mxu1 %v3746_v49  ;;  %v3794_v49 = vld [vmem:[#allocation4 + $0x6c0] sm:$0xff]  }
  0xb8   :  { %3351 = vmatpush3.bf16.msra.mxu0 %v3747_v50  ;;  %v3795_v50 = vld [vmem:[#allocation4 + $0x600] sm:$0xff]  }
  0xb9   :  { %3373 = vmatpush3.bf16.msra.mxu1 %v3748_v51  ;;  %3352 = vmatprep.subr.bf16.mxu0 %v3749_v52  ;;  %v3796_v51 = vld [vmem:[#allocation4 + $0x680] sm:$0xff]   ;;  %v3797_v52 = vld [vmem:[#allocation4 + $0x648] sm:$0xff]  }
  0xba   :  { %3374 = vmatprep.subr.bf16.mxu1 %v3750_v53  ;;  %v3798_v53 = vld [vmem:[#allocation4 + $0x6c8] sm:$0xff]  }
  0xbc   :  { %3353 = vmatpush3.bf16.msra.mxu0 %v3751_v54  ;;  %v3799_v54 = vld [vmem:[#allocation4 + $0x608] sm:$0xff]  }
  0xbd   :  { %3375 = vmatpush3.bf16.msra.mxu1 %v3752_v55  ;;  %3354 = vmatprep.subr.bf16.mxu0 %v3753_v56  ;;  %v3800_v55 = vld [vmem:[#allocation4 + $0x688] sm:$0xff]   ;;  %v3801_v56 = vld [vmem:[#allocation4 + $0x650] sm:$0xff]  }
  0xbe   :  { %3376 = vmatprep.subr.bf16.mxu1 %v3754_v57  ;;  %v3802_v57 = vld [vmem:[#allocation4 + $0x6d0] sm:$0xff]  }
  0xc0   :  { %3355 = vmatpush3.bf16.msra.mxu0 %v3755_v58  ;;  %v3803_v58 = vld [vmem:[#allocation4 + $0x610] sm:$0xff]  }
  0xc1   :  { %3377 = vmatpush3.bf16.msra.mxu1 %v3756_v59  ;;  %3356 = vmatprep.subr.bf16.mxu0 %v3757_v60  ;;  %v3804_v59 = vld [vmem:[#allocation4 + $0x690] sm:$0xff]   ;;  %v3805_v60 = vld [vmem:[#allocation4 + $0x658] sm:$0xff]  }
  0xc2   :  { %3378 = vmatprep.subr.bf16.mxu1 %v3758_v61  ;;  %v3806_v61 = vld [vmem:[#allocation4 + $0x6d8] sm:$0xff]  }
  0xc4   :  { %3357 = vmatpush3.bf16.msra.mxu0 %v3759_v62  ;;  %v3807_v62 = vld [vmem:[#allocation4 + $0x618] sm:$0xff]  }
  0xc5   :  { %3379 = vmatpush3.bf16.msra.mxu1 %v3760_v63  ;;  %3386 = vmatprep.subr.bf16.mxu0 %v3761_v8  ;;  %v3808_v63 = vld [vmem:[#allocation4 + $0x698] sm:$0xff]   ;;  %v3817_v8 = vld [vmem:[#allocation4 + $0x670] sm:$0xff]  }
  0xc6   :  { %3408 = vmatprep.subr.bf16.mxu1 %v3762_v9  ;;  %v3818_v9 = vld [vmem:[#allocation4 + $0x6f0] sm:$0xff]  }
  0xc7   :  { %2519 = vmatmul.mubr.bf16.vlgmr.msra.gmra.mrb[16].mxu0 %v95_v6  ;;  %v3815_v6 = vld [vmem:[#allocation4 + $0x628] sm:$0xff]  }
  0xc8   :  { %2559 = vmatmul.mubr.bf16.vlgmr.msra.gmra.mrb[16].mxu1 %v97_v7  ;;  %3387 = vmatpush3.bf16.msra.mxu0 %v3763_v10  ;;  %v3816_v7 = vld [vmem:[#allocation4 + $0x6a8] sm:$0xff]   ;;  %v3819_v10 = vld [vmem:[#allocation4 + $0x630] sm:$0xff]  }
  0xc9   :  { %3409 = vmatpush3.bf16.msra.mxu1 %v3764_v11  ;;  %3388 = vmatprep.subr.bf16.mxu0 %v3765_v12  ;;  %v3820_v11 = vld [vmem:[#allocation4 + $0x6b0] sm:$0xff]   ;;  %v3821_v12 = vld [vmem:[#allocation4 + $0x678] sm:$0xff]  }
  0xca   :  { %3410 = vmatprep.subr.bf16.mxu1 %v3766_v13  ;;  %2598 = vmatprep.mubr.bf16.mxu0 %v100_v41  ;;  %v3822_v13 = vld [vmem:[#allocation4 + $0x6f8] sm:$0xff]  }
  0xcb   :  { %2638 = vmatprep.mubr.bf16.mxu1 %v102_v45  ;;  %v3840_v41 = vld [vmem:[#allocation4 + $0x798] sm:$0xff]  }
  0xcc   :  { %3389 = vmatpush3.bf16.msra.mxu0 %v3767_v14  ;;  %v3823_v14 = vld [vmem:[#allocation4 + $0x638] sm:$0xff]  }
  0xcd   :  { %3411 = vmatpush3.bf16.msra.mxu1 %v3768_v15  ;;  %3390 = vmatprep.subr.bf16.mxu0 %v3769_v16  ;;  %v3824_v15 = vld [vmem:[#allocation4 + $0x6b8] sm:$0xff]   ;;  %v72_v16 = vld [vmem:[#allocation2 + $0xc8] sm:$0xff] }
  0xce   :  { %3412 = vmatprep.subr.bf16.mxu1 %v3770_v17  ;;  %v74_v17 = vld [vmem:[#allocation2 + $0xd8] sm:$0xff] }
  0xd0   :  { %3391 = vmatpush3.bf16.msra.mxu0 %v3771_v18  ;;  %v71_v18 = vld [vmem:[#allocation2 + $0xc0] sm:$0xff] }
  0xd1   :  { %3413 = vmatpush3.bf16.msra.mxu1 %v3772_v19  ;;  %3392 = vmatprep.subr.bf16.mxu0 %v3773_v20  ;;  %v104_v19 = vpack.c.bf16 %v72_v16, %v72_v16  ;;  %v106_v20 = vpack.c.bf16 %v74_v17, %v74_v17 }
  0xd2   :  { %3414 = vmatprep.subr.bf16.mxu1 %v3774_v21  ;;  %v103_v21 = vpack.c.bf16 %v71_v18, %v71_v18 }
  0xd4   :  { %3393 = vmatpush3.bf16.msra.mxu0 %v3775_v22  ;;  %v73_v22 = vld [vmem:[#allocation2 + $0xd0] sm:$0xff] }
  0xd5   :  { %3415 = vmatpush3.bf16.msra.mxu1 %v3776_v23  ;;  %3394 = vmatprep.subr.bf16.mxu0 %v3777_v24  ;;  %v105_v23 = vpack.c.bf16 %v73_v22, %v73_v22  ;;  %v3825_v24 = vld [vmem:[#allocation4 + $0x740] sm:$0xff]  }
  0xd6   :  { %3416 = vmatprep.subr.bf16.mxu1 %v3778_v25  ;;  %v3826_v25 = vld [vmem:[#allocation4 + $0x7c0] sm:$0xff]  }
  0xd8   :  { %3395 = vmatpush3.bf16.msra.mxu0 %v3779_v26  ;;  %v3827_v26 = vld [vmem:[#allocation4 + $0x700] sm:$0xff]  }
  0xd9   :  { %3417 = vmatpush3.bf16.msra.mxu1 %v3780_v27  ;;  %3396 = vmatprep.subr.bf16.mxu0 %v3781_v28  ;;  %v3828_v27 = vld [vmem:[#allocation4 + $0x780] sm:$0xff]   ;;  %v3829_v28 = vld [vmem:[#allocation4 + $0x748] sm:$0xff]  }
  0xda   :  { %3418 = vmatprep.subr.bf16.mxu1 %v3782_v29  ;;  %v3830_v29 = vld [vmem:[#allocation4 + $0x7c8] sm:$0xff]  }
  0xdc   :  { %3397 = vmatpush3.bf16.msra.mxu0 %v3783_v30  ;;  %v3831_v30 = vld [vmem:[#allocation4 + $0x708] sm:$0xff]  }
  0xdd   :  { %3419 = vmatpush3.bf16.msra.mxu1 %v3784_v31  ;;  %3398 = vmatprep.subr.bf16.mxu0 %v3785_v32  ;;  %v3832_v31 = vld [vmem:[#allocation4 + $0x788] sm:$0xff]   ;;  %v3833_v32 = vld [vmem:[#allocation4 + $0x750] sm:$0xff]  }
  0xde   :  { %3420 = vmatprep.subr.bf16.mxu1 %v3786_v33  ;;  %v3834_v33 = vld [vmem:[#allocation4 + $0x7d0] sm:$0xff]  }
  0xe0   :  { %3399 = vmatpush3.bf16.msra.mxu0 %v3787_v34  ;;  %v3835_v34 = vld [vmem:[#allocation4 + $0x710] sm:$0xff]  }
  0xe1   :  { %3421 = vmatpush3.bf16.msra.mxu1 %v3788_v35  ;;  %3400 = vmatprep.subr.bf16.mxu0 %v3789_v36  ;;  %v3836_v35 = vld [vmem:[#allocation4 + $0x790] sm:$0xff]   ;;  %v3837_v36 = vld [vmem:[#allocation4 + $0x758] sm:$0xff]  }
  0xe2   :  { %3422 = vmatprep.subr.bf16.mxu1 %v3790_v37  ;;  %v3838_v37 = vld [vmem:[#allocation4 + $0x7d8] sm:$0xff]  }
  0xe4   :  { %3401 = vmatpush3.bf16.msra.mxu0 %v3791_v38 }
  0xe5   :  { %3423 = vmatpush3.bf16.msra.mxu1 %v3792_v39  ;;  %3430 = vmatprep.subr.bf16.mxu0 %v3793_v48  ;;  %v3839_v39 = vld [vmem:[#allocation4 + $0x718] sm:$0xff]  }
  0xe6   :  { %3452 = vmatprep.subr.bf16.mxu1 %v3794_v49  ;;  %v3843_v49 = vld [vmem:[#allocation4 + $0x720] sm:$0xff]  }
  0xe7   :  { %2599 = vmatmul.mubr.bf16.vlgmr.msra.gmra.mrb[20].mxu0 %v99_v46  ;;  %v3842_v46 = vld [vmem:[#allocation4 + $0x7e0] sm:$0xff]  }
  0xe8   :  { %2639 = vmatmul.mubr.bf16.vlgmr.msra.gmra.mrb[20].mxu1 %v101_v47  ;;  %3431 = vmatpush3.bf16.msra.mxu0 %v3795_v50 }
  0xe9   :  { %3453 = vmatpush3.bf16.msra.mxu1 %v3796_v51  ;;  %3432 = vmatprep.subr.bf16.mxu0 %v3797_v52  ;;  %v3844_v51 = vld [vmem:[#allocation4 + $0x7a0] sm:$0xff]  }
  0xea   :  { %3454 = vmatprep.subr.bf16.mxu1 %v3798_v53  ;;  %2678 = vmatprep.mubr.bf16.mxu0 %v104_v19  ;;  %v2908_v52 = vld [vmem:[%s4032_s2] ss:$0 sm:$0xff] }
  0xeb   :  { %2718 = vmatprep.mubr.bf16.mxu1 %v106_v20 }
  0xec   :  { %3433 = vmatpush3.bf16.msra.mxu0 %v3799_v54 }
  0xed   :  { %3455 = vmatpush3.bf16.msra.mxu1 %v3800_v55  ;;  %3434 = vmatprep.subr.bf16.mxu0 %v3801_v56  ;;  %v3845_v55 = vld [vmem:[#allocation4 + $0x768] sm:$0xff]  }
  0xee   :  { %3456 = vmatprep.subr.bf16.mxu1 %v3802_v57  ;;  %v3846_v57 = vld [vmem:[#allocation4 + $0x7e8] sm:$0xff]  }
  0xf0   :  { %3435 = vmatpush3.bf16.msra.mxu0 %v3803_v58 }
  0xf1   :  { %3457 = vmatpush3.bf16.msra.mxu1 %v3804_v59  ;;  %3436 = vmatprep.subr.bf16.mxu0 %v3805_v60  ;;  %v3847_v59 = vld [vmem:[#allocation4 + $0x728] sm:$0xff]  }
  0xf2   :  { %3458 = vmatprep.subr.bf16.mxu1 %v3806_v61  ;;  %v3848_v60 = vld [vmem:[#allocation4 + $0x7a8] sm:$0xff]   ;;  %v3849_v61 = vld [vmem:[#allocation4 + $0x770] sm:$0xff]  }
  0xf4   :  { %3437 = vmatpush3.bf16.msra.mxu0 %v3807_v62  ;;  %v3850_v62 = vld [vmem:[#allocation4 + $0x7f0] sm:$0xff]  }
  0xf5   :  { %3459 = vmatpush3.bf16.msra.mxu1 %v3808_v63  ;;  %3438 = vmatprep.subr.bf16.mxu0 %v3809_v0  ;;  %v3851_v63 = vld [vmem:[#allocation4 + $0x730] sm:$0xff]  }
  0xf6   :  { %3460 = vmatprep.subr.bf16.mxu1 %v3810_v1  ;;  %v3852_v0 = vld [vmem:[#allocation4 + $0x7b0] sm:$0xff]   ;;  %v3853_v1 = vld [vmem:[#allocation4 + $0x778] sm:$0xff]  }
  0xf8   :  { %3439 = vmatpush3.bf16.msra.mxu0 %v3811_v2  ;;  %v3854_v2 = vld [vmem:[#allocation4 + $0x7f8] sm:$0xff]  }
  0xf9   :  { %3461 = vmatpush3.bf16.msra.mxu1 %v3812_v3  ;;  %3440 = vmatprep.subr.bf16.mxu0 %v3813_v4  ;;  %v3855_v3 = vld [vmem:[#allocation4 + $0x738] sm:$0xff]  }
  0xfa   :  { %3462 = vmatprep.subr.bf16.mxu1 %v3814_v5  ;;  %v3856_v4 = vld [vmem:[#allocation4 + $0x7b8] sm:$0xff]   ;;  %v76_v5 = vld [vmem:[#allocation2 + $0xe8] sm:$0xff] }
  0xfc   :  { %3441 = vmatpush3.bf16.msra.mxu0 %v3815_v6  ;;  %v108_v6 = vpack.c.bf16 %v76_v5, %v76_v5  ;;  %v2820_v5 = vld [vmem:[%s4033_s3 + $0x68] sm:$0xff] }
  0xfd   :  { %3463 = vmatpush3.bf16.msra.mxu1 %v3816_v7  ;;  %3442 = vmatprep.subr.bf16.mxu0 %v3817_v8  ;;  %v78_v7 = vld [vmem:[#allocation2 + $0xf8] sm:$0xff]  ;;  %v75_v8 = vld [vmem:[#allocation2 + $0xe0] sm:$0xff] }
  0xfe   :  { %3464 = vmatprep.subr.bf16.mxu1 %v3818_v9  ;;  %v77_v9 = vld [vmem:[#allocation2 + $0xf0] sm:$0xff] }
 0x100   :  { %3443 = vmatpush3.bf16.msra.mxu0 %v3819_v10  ;;  %v110_v10 = vpack.c.bf16 %v78_v7, %v78_v7  ;;  %v2821_v7 = vld [vmem:[%s4033_s3 + $0x70] sm:$0xff] }
 0x101   :  { %3465 = vmatpush3.bf16.msra.mxu1 %v3820_v11  ;;  %3444 = vmatprep.subr.bf16.mxu0 %v3821_v12  ;;  %v107_v11 = vpack.c.bf16 %v75_v8, %v75_v8  ;;  %v109_v12 = vpack.c.bf16 %v77_v9, %v77_v9  ;;  %v2822_v8 = vld [vmem:[%s4033_s3 + $0x78] sm:$0xff] }
 0x102   :  { %3466 = vmatprep.subr.bf16.mxu1 %v3822_v13  ;;  %v3592_v9 = vpack.c.bf16 %v2822_v8, %v2821_v7 }
 0x104   :  { %3445 = vmatpush3.bf16.msra.mxu0 %v3823_v14 }
 0x105   :  { %3467 = vmatpush3.bf16.msra.mxu1 %v3824_v15  ;;  %3474 = vmatprep.subr.bf16.mxu0 %v3825_v24 }
 0x106   :  { %3496 = vmatprep.subr.bf16.mxu1 %v3826_v25 }
 0x107   :  { %2679 = vmatmul.mubr.bf16.vlgmr.msra.gmra.mrb[24].mxu0 %v103_v21 }
 0x108   :  { %2719 = vmatmul.mubr.bf16.vlgmr.msra.gmra.mrb[24].mxu1 %v105_v23  ;;  %3475 = vmatpush3.bf16.msra.mxu0 %v3827_v26 }
 0x109   :  { %3497 = vmatpush3.bf16.msra.mxu1 %v3828_v27  ;;  %3476 = vmatprep.subr.bf16.mxu0 %v3829_v28 }
 0x10a   :  { %3498 = vmatprep.subr.bf16.mxu1 %v3830_v29  ;;  %2758 = vmatprep.mubr.bf16.mxu0 %v108_v6 }
 0x10b   :  { %2798 = vmatprep.mubr.bf16.mxu1 %v110_v10  ;;  %v3911_v10 = vmov 0.0  }
 0x10c   :  { %3477 = vmatpush3.bf16.msra.mxu0 %v3831_v30 }
 0x10d   :  { %3499 = vmatpush3.bf16.msra.mxu1 %v3832_v31  ;;  %3478 = vmatprep.subr.bf16.mxu0 %v3833_v32 }
 0x10e   :  { %3500 = vmatprep.subr.bf16.mxu1 %v3834_v33 }
 0x110   :  { %3479 = vmatpush3.bf16.msra.mxu0 %v3835_v34 }
 0x111   :  { %3501 = vmatpush3.bf16.msra.mxu1 %v3836_v35  ;;  %3480 = vmatprep.subr.bf16.mxu0 %v3837_v36 }
 0x112   :  { %3502 = vmatprep.subr.bf16.mxu1 %v3838_v37  ;;  %v2807_v37 = vld [vmem:[%s4033_s3] sm:$0xff] }
 0x114   :  { %3481 = vmatpush3.bf16.msra.mxu0 %v3839_v39  ;;  %v2809_v39 = vld [vmem:[%s4033_s3 + $0x10] sm:$0xff] }
 0x115   :  { %3503 = vmatpush3.bf16.msra.mxu1 %v3840_v41  ;;  %3482 = vmatprep.subr.bf16.mxu0 %v3841_v43 }
 0x116   :  { %3504 = vmatprep.subr.bf16.mxu1 %v3842_v46 }
 0x118   :  { %3483 = vmatpush3.bf16.msra.mxu0 %v3843_v49 }
 0x119   :  { %3505 = vmatpush3.bf16.msra.mxu1 %v3844_v51  ;;  %3484 = vmatprep.subr.bf16.mxu0 %v3845_v55  ;;  %v2816_v51 = vld [vmem:[%s4033_s3 + $0x48] sm:$0xff] }
 0x11a   :  { %v3182_v38 = vpop.f32.mrb[0].mxu0  ;;  %3506 = vmatprep.subr.bf16.mxu1 %v3846_v57 }
 0x11b   :  { %v3204_v40 = vpop.f32.mrb[0].mxu1  ;;  %v3183_v42 = vpop.f32.mrb[1].mxu0 }
 0x11c   :  { %v3184_v44 = vadd.f32 %v3183_v42, %v3182_v38  ;;  %v3205_v45 = vpop.f32.mrb[1].mxu1  ;;  %v3185_v48 = vpop.f32.mrb[2].mxu0  ;;  %3485 = vmatpush3.bf16.msra.mxu0 %v3847_v59  ;;  %v2808_v38 = vld [vmem:[%s4033_s3 + $0x8] sm:$0xff]  ;;  %v2810_v42 = vld [vmem:[%s4033_s3 + $0x18] sm:$0xff] }
 0x11d   :  { %v3206_v47 = vadd.f32 %v3205_v45, %v3204_v40  ;;  %v3207_v50 = vpop.f32.mrb[2].mxu1  ;;  %v3186_v53 = vpop.f32.mrb[3].mxu0  ;;  %3507 = vmatpush3.bf16.msra.mxu1 %v3848_v60  ;;  %3486 = vmatprep.subr.bf16.mxu0 %v3849_v61  ;;  %v3909_v40 = vmov 0.0|0.0   ;;  %v3571_v41 = vpack.c.bf16 %v2808_v38, %v2807_v37  ;;  %v3574_v43 = vpack.c.bf16 %v2810_v42, %v2809_v39  ;;  %v2812_v45 = vld [vmem:[%s4033_s3 + $0x28] sm:$0xff]  ;;  %v2814_v48 = vld [vmem:[%s4033_s3 + $0x38] sm:$0xff] }
 0x11e   :  { %v2201_v54 = vadd.f32 %v3184_v44, %v2908_v52  ;;  %v3208_v56 = vpop.f32.mrb[3].mxu1  ;;  %3508 = vmatprep.subr.bf16.mxu1 %v3850_v62  ;;  %v2811_v44 = vld [vmem:[%s4033_s3 + $0x20] sm:$0xff]  ;;  %v2817_v53 = vld [vmem:[%s4033_s3 + $0x50] sm:$0xff] }
 0x11f   :  { %v3577_v46 = vpack.c.bf16 %v2812_v45, %v2811_v44  ;;  %v2815_v50 = vld [vmem:[%s4033_s3 + $0x40] sm:$0xff] }
 0x120   :  { %v2241_v58 = vadd.f32 %v3206_v47, %v2201_v54  ;;  %3487 = vmatpush3.bf16.msra.mxu0 %v3851_v63  ;;  %v2813_v47 = vld [vmem:[%s4033_s3 + $0x30] sm:$0xff]  ;;  %v3583_v52 = vpack.c.bf16 %v2816_v51, %v2815_v50  ;;  %v2818_v54 = vld [vmem:[%s4033_s3 + $0x58] sm:$0xff] }
 0x121   :  { %3509 = vmatpush3.bf16.msra.mxu1 %v3852_v0  ;;  %3488 = vmatprep.subr.bf16.mxu0 %v3853_v1  ;;  %v3580_v49 = vpack.c.bf16 %v2814_v48, %v2813_v47  ;;  %v3586_v55 = vpack.c.bf16 %v2818_v54, %v2817_v53 }
 0x122   :  { %3510 = vmatprep.subr.bf16.mxu1 %v3854_v2 }
 0x124   :  { %3489 = vmatpush3.bf16.msra.mxu0 %v3855_v3 }
 0x125   :  { %3511 = vmatpush3.bf16.msra.mxu1 %v3856_v4  ;;  %3570 = vmatprep.subr.bf16.mxu0 %v3909_v40  ;;  %v2819_v4 = vld [vmem:[%s4033_s3 + $0x60] sm:$0xff] }
 0x126   :  { %v3589_v6 = vpack.c.bf16 %v2820_v5, %v2819_v4 }
 0x127   :  { %2759 = vmatmul.mubr.bf16.vlgmr.msra.gmra.mrb[28].mxu0 %v107_v11 }
 0x128   :  { %2799 = vmatmul.mubr.bf16.vlgmr.msra.gmra.mrb[28].mxu1 %v109_v12  ;;  %3572 = vmatpush3.bf16.msra.mxu0 %v3571_v41 }
 0x129   :  { %3573 = vmatprep.subr.bf16.mxu0 %v3909_v40  ;;  %3567 = vmatprep.mubr.msk.f32.mxu0 %vm3910_vm0, %v3911_v10 }
 0x12c   :  { %3575 = vmatpush3.bf16.msra.mxu0 %v3574_v43 }
 0x12d   :  { %3576 = vmatprep.subr.bf16.mxu0 %v3909_v40 }
 0x130   :  { %3578 = vmatpush3.bf16.msra.mxu0 %v3577_v46 }
 0x131   :  { %3579 = vmatprep.subr.bf16.mxu0 %v3909_v40 }
 0x134   :  { %3581 = vmatpush3.bf16.msra.mxu0 %v3580_v49 }
 0x135   :  { %3582 = vmatprep.subr.bf16.mxu0 %v3909_v40 }
 0x138   :  { %3584 = vmatpush3.bf16.msra.mxu0 %v3583_v52 }
 0x139   :  { %3585 = vmatprep.subr.bf16.mxu0 %v3909_v40 }
 0x13a   :  { %v3226_v13 = vpop.f32.mrb[4].mxu0 }
 0x13b   :  { %v3248_v14 = vpop.f32.mrb[4].mxu1  ;;  %v3227_v15 = vpop.f32.mrb[5].mxu0 }
 0x13c   :  { %v3228_v16 = vadd.f32 %v3227_v15, %v3226_v13  ;;  %v3249_v17 = vpop.f32.mrb[5].mxu1  ;;  %v3229_v18 = vpop.f32.mrb[6].mxu0  ;;  %3587 = vmatpush3.bf16.msra.mxu0 %v3586_v55 }
 0x13d   :  { %v3250_v19 = vadd.f32 %v3249_v17, %v3248_v14  ;;  %v3251_v20 = vpop.f32.mrb[6].mxu1  ;;  %v3230_v21 = vpop.f32.mrb[7].mxu0  ;;  %3588 = vmatprep.subr.bf16.mxu0 %v3909_v40 }
 0x13e   :  { %v2281_v22 = vadd.f32 %v3228_v16, %v2241_v58  ;;  %v3252_v23 = vpop.f32.mrb[7].mxu1 }
 0x140   :  { %v2321_v24 = vadd.f32 %v3250_v19, %v2281_v22  ;;  %3590 = vmatpush3.bf16.msra.mxu0 %v3589_v6 }
 0x141   :  { %3591 = vmatprep.subr.bf16.mxu0 %v3909_v40 }
 0x144   :  { %3593 = vmatpush3.bf16.msra.mxu0 %v3592_v9 }
 0x15a   :  { %v3270_v25 = vpop.f32.mrb[8].mxu0 }
 0x15b   :  { %v3292_v26 = vpop.f32.mrb[8].mxu1  ;;  %v3271_v27 = vpop.f32.mrb[9].mxu0 }
 0x15c   :  { %v3272_v28 = vadd.f32 %v3271_v27, %v3270_v25  ;;  %v3293_v29 = vpop.f32.mrb[9].mxu1  ;;  %v3273_v30 = vpop.f32.mrb[10].mxu0 }
 0x15d   :  { %v3294_v31 = vadd.f32 %v3293_v29, %v3292_v26  ;;  %v3295_v32 = vpop.f32.mrb[10].mxu1  ;;  %v3274_v33 = vpop.f32.mrb[11].mxu0 }
 0x15e   :  { %v2361_v34 = vadd.f32 %v3272_v28, %v2321_v24  ;;  %v3296_v35 = vpop.f32.mrb[11].mxu1 }
 0x160   :  { %v2401_v36 = vadd.f32 %v3294_v31, %v2361_v34 }
 0x17a   :  { %v3314_v56 = vpop.f32.mrb[12].mxu0 }
 0x17b   :  { %v3336_v57 = vpop.f32.mrb[12].mxu1  ;;  %v3315_v58 = vpop.f32.mrb[13].mxu0 }
 0x17c   :  { %v3337_v59 = vpop.f32.mrb[13].mxu1  ;;  %v3316_v60 = vadd.f32 %v3315_v58, %v3314_v56  ;;  %v3317_v62 = vpop.f32.mrb[14].mxu0 }
 0x17d   :  { %v3338_v61 = vadd.f32 %v3337_v59, %v3336_v57  ;;  %v3339_v63 = vpop.f32.mrb[14].mxu1  ;;  %v3318_v0 = vpop.f32.mrb[15].mxu0 }
 0x17e   :  { %v3340_v1 = vpop.f32.mrb[15].mxu1  ;;  %v2441_v2 = vadd.f32 %v3316_v60, %v2401_v36  ;;  %v3165_v60 = vld [vmem:[%s4034_s4] ss:$0 sm:$0xff] }
 0x180   :  { %v2481_v3 = vadd.f32 %v3338_v61, %v2441_v2 }
 0x19a   :  { %v3358_v11 = vpop.f32.mrb[16].mxu0 }
 0x19b   :  { %v3380_v12 = vpop.f32.mrb[16].mxu1  ;;  %v3359_v13 = vpop.f32.mrb[17].mxu0 }
 0x19c   :  { %v3360_v14 = vadd.f32 %v3359_v13, %v3358_v11  ;;  %v3381_v15 = vpop.f32.mrb[17].mxu1  ;;  %v3361_v16 = vpop.f32.mrb[18].mxu0 }
 0x19d   :  { %v3382_v17 = vadd.f32 %v3381_v15, %v3380_v12  ;;  %v3383_v18 = vpop.f32.mrb[18].mxu1  ;;  %v3362_v19 = vpop.f32.mrb[19].mxu0 }
 0x19e   :  { %v2521_v20 = vadd.f32 %v3360_v14, %v2481_v3  ;;  %v3384_v21 = vpop.f32.mrb[19].mxu1 }
 0x1a0   :  { %v2561_v22 = vadd.f32 %v3382_v17, %v2521_v20 }
 0x1ba   :  { %v3402_v23 = vpop.f32.mrb[20].mxu0 }
 0x1bb   :  { %v3424_v24 = vpop.f32.mrb[20].mxu1  ;;  %v3403_v25 = vpop.f32.mrb[21].mxu0 }
 0x1bc   :  { %v3404_v26 = vadd.f32 %v3403_v25, %v3402_v23  ;;  %v3425_v27 = vpop.f32.mrb[21].mxu1  ;;  %v3405_v28 = vpop.f32.mrb[22].mxu0 }
 0x1bd   :  { %v3426_v29 = vadd.f32 %v3425_v27, %v3424_v24  ;;  %v3427_v30 = vpop.f32.mrb[22].mxu1  ;;  %v3406_v31 = vpop.f32.mrb[23].mxu0 }
 0x1be   :  { %v2601_v32 = vadd.f32 %v3404_v26, %v2561_v22  ;;  %v3428_v33 = vpop.f32.mrb[23].mxu1 }
 0x1c0   :  { %v2641_v34 = vadd.f32 %v3426_v29, %v2601_v32 }
 0x1da   :  { %v3446_v35 = vpop.f32.mrb[24].mxu0 }
 0x1db   :  { %v3468_v36 = vpop.f32.mrb[24].mxu1  ;;  %v3447_v37 = vpop.f32.mrb[25].mxu0 }
 0x1dc   :  { %v3469_v38 = vpop.f32.mrb[25].mxu1  ;;  %v3448_v39 = vadd.f32 %v3447_v37, %v3446_v35  ;;  %v3449_v41 = vpop.f32.mrb[26].mxu0 }
 0x1dd   :  { %v3470_v40 = vadd.f32 %v3469_v38, %v3468_v36  ;;  %v3471_v42 = vpop.f32.mrb[26].mxu1  ;;  %v3450_v43 = vpop.f32.mrb[27].mxu0 }
 0x1de   :  { %v3472_v44 = vpop.f32.mrb[27].mxu1  ;;  %v2681_v45 = vadd.f32 %v3448_v39, %v2641_v34 }
 0x1e0   :  { %v2721_v46 = vadd.f32 %v3470_v40, %v2681_v45 }
 0x1fa   :  { %v3490_v47 = vpop.f32.mrb[28].mxu0 }
 0x1fb   :  { %v3512_v48 = vpop.f32.mrb[28].mxu1  ;;  %v3491_v49 = vpop.f32.mrb[29].mxu0 }
 0x1fc   :  { %v3492_v50 = vadd.f32 %v3491_v49, %v3490_v47  ;;  %v3513_v51 = vpop.f32.mrb[29].mxu1  ;;  %v3493_v52 = vpop.f32.mrb[30].mxu0 }
 0x1fd   :  { %v3514_v53 = vadd.f32 %v3513_v51, %v3512_v48  ;;  %v3515_v54 = vpop.f32.mrb[30].mxu1  ;;  %v3494_v55 = vpop.f32.mrb[31].mxu0 }
 0x1fe   :  { %v2761_v56 = vadd.f32 %v3492_v50, %v2721_v46  ;;  %v3516_v57 = vpop.f32.mrb[31].mxu1 }
 0x200   :  { %v2801_v58 = vadd.f32 %v3514_v53, %v2761_v56 }
 0x202   :  { %v2806_v59 = vmax.f32 %v2801_v58, 0.0 }
 0x204   :  { %3568 = vmatmul.mubr.f32.vlgmr.msra.gmra.mrb[32].mxu0 %v2806_v59 }
 0x2d7   :  { %v2896_v61 = vpop.f32.mrb[32].mxu0 }
 0x2d8   :  { %v2897_v62 = vadd.f32 %v3165_v60, %v2896_v61  ;;  %v3569_v63 = vpop.f32.mrb[33].mxu0 }
 0x2da   :  { %2901 = vst.msk [vmem:[%s4035_s5] sm:$0xff] %vm2900_vm1, %v2897_v62 }
 0x2db   :  { %2906 = vsyncpa [#allocation3], 1 }
 0x2dc   :  { %2907 = vsyncpa [#allocation5], 1 }

</bundles_post_ra>
